<compile_context>
chip_gen: v5e
topology: v5e:2x2
jax: 0.10.0
libtpu: 0.0.40
codegen_flags: <defaults>
</compile_context>

<pallas_src>
import jax
import jax.numpy as jnp
from jax import lax
from jax.experimental import pallas as pl
from jax.experimental.pallas import tpu as pltpu

# ---------------- configuration (small, lane/sublane friendly) ---------------
HIDDEN_DIM = 128
ACTION_DIM = 4
BATCH = 8
LOG_STD_MIN = -20.0
LOG_STD_MAX = 2.0


# ---------------- Pallas kernel ----------------------------------------------
def _policy_kernel(x_ref,    # (B, H)
                   w_ref,    # (H, 2A)  = [Wm | Ws]
                   b_ref,    # (1, 2A)  = [bm | bs]
                   y_ref):   # (B, 2A)  = [mean | clamped log_std]
    # Single fused matmul on the MXU, f32 accumulate.
    y = jnp.dot(x_ref[...], w_ref[...], preferred_element_type=jnp.float32)
    y = y + b_ref[...]
    # Clamp only the log_std lanes (cols >= ACTION_DIM); mean lanes pass through.
    col = lax.broadcasted_iota(jnp.int32, y.shape, 1)
    y = jnp.where(col >= ACTION_DIM,
                  jnp.clip(y, LOG_STD_MIN, LOG_STD_MAX),
                  y)
    # One lane-contiguous store: no lane rotate, single output DMA.
    y_ref[...] = y.astype(y_ref.dtype)


def normal_tanh_policy(x, params):
    """x: (B, HIDDEN_DIM) -> (mean, log_std), each (B, ACTION_DIM)."""
    B, H = x.shape
    A = ACTION_DIM
    vmem = pl.BlockSpec(memory_space=pltpu.MemorySpace.VMEM)
    cost = pl.CostEstimate(
        flops=2 * B * H * (2 * A),
        transcendentals=0,
        bytes_accessed=(B * H + H * 2 * A + 2 * A + B * 2 * A) * 4,
    )
    y = pl.pallas_call(
        _policy_kernel,
        out_shape=jax.ShapeDtypeStruct((B, 2 * A), jnp.float32),
        in_specs=[vmem, vmem, vmem],
        out_specs=vmem,
        cost_estimate=cost,
    )(x, params["w_cat"], params["b_cat"])
    # Trivial slice in the wrapper (pure layout, fused away by XLA).
    mean = y[:, :A]
    log_std = y[:, A:]
    return mean, log_std


# ---------------- deterministic parameter init (matches __init__) ------------
def _xavier_uniform(key, fan_in, fan_out):
    bound = (6.0 / (fan_in + fan_out)) ** 0.5
    # stored as (in, out) so the kernel computes x @ W
    return jax.random.uniform(key, (fan_in, fan_out), jnp.float32, -bound, bound)


def init_params(key):
    km, ks = jax.random.split(key)
    wm = _xavier_uniform(km, HIDDEN_DIM, ACTION_DIM)   # fc_mean.weight (T)
    ws = _xavier_uniform(ks, HIDDEN_DIM, ACTION_DIM)   # fc_log_std.weight (T)
    bm = jnp.zeros((ACTION_DIM,), jnp.float32)         # fc_mean.bias = 0
    bs = jnp.zeros((ACTION_DIM,), jnp.float32)         # fc_log_std.bias = 0
    return {
        # packed forms consumed by the kernel (one weight DMA, one bias DMA)
        "w_cat": jnp.concatenate([wm, ws], axis=1),            # (H, 2A)
        "b_cat": jnp.concatenate([bm, bs])[None, :],           # (1, 2A)
        # unpacked forms kept for the pure-JAX reference
        "wm": wm, "ws": ws, "bm": bm, "bs": bs,
    }


# ---------------- pure-JAX reference (for correctness check) -----------------
def reference_forward(x, p):
    mean = x @ p["wm"] + p["bm"]
    log_std = jnp.clip(x @ p["ws"] + p["bs"], LOG_STD_MIN, LOG_STD_MAX)
    return mean, log_std


# ---------------- main --------------------------------------------------------
if __name__ == "__main__":
    key = jax.random.PRNGKey(0)
    k_x, k_par = jax.random.split(key)
    # scale inputs so the log_std clamp path is actually exercised
    x = 3.0 * jax.random.normal(k_x, (BATCH, HIDDEN_DIM), jnp.float32)
    params = init_params(k_par)

    mean, log_std = normal_tanh_policy(x, params)
    mean = jax.block_until_ready(mean)
    log_std = jax.block_until_ready(log_std)

    ref_mean, ref_log_std = reference_forward(x, params)
    assert mean.shape == (BATCH, ACTION_DIM), mean.shape
    assert log_std.shape == (BATCH, ACTION_DIM), log_std.shape
    assert jnp.allclose(mean, ref_mean, atol=1e-3, rtol=1e-3), (
        f"mean max abs err {jnp.max(jnp.abs(mean - ref_mean))}")
    assert jnp.allclose(log_std, ref_log_std, atol=1e-3, rtol=1e-3), (
        f"log_std max abs err {jnp.max(jnp.abs(log_std - ref_log_std))}")
    assert float(jnp.max(log_std)) <= LOG_STD_MAX + 1e-6
    assert float(jnp.min(log_std)) >= LOG_STD_MIN - 1e-6
    print("KERNEL_OK")
</pallas_src>

<mosaic_0001>
module attributes {stable_mosaic.version = 11 : i64} {
  func.func @_policy_kernel(%arg0: memref<8x128xf32, #tpu.memory_space<vmem>>, %arg1: memref<128x8xf32, #tpu.memory_space<vmem>>, %arg2: memref<1x8xf32, #tpu.memory_space<vmem>>, %arg3: memref<8x8xf32, #tpu.memory_space<vmem>>) attributes {dimension_semantics = [], scalar_prefetch = 0 : i64, scratch_operands = 0 : i64, tpu.core_type = #tpu.core_type<tc>} {
    %c0 = arith.constant 0 : index
    %c0_0 = arith.constant 0 : index
    %0 = vector.load %arg0[%c0, %c0_0] : memref<8x128xf32, #tpu.memory_space<vmem>>, vector<8x128xf32>
    %c0_1 = arith.constant 0 : index
    %c0_2 = arith.constant 0 : index
    %1 = vector.load %arg1[%c0_1, %c0_2] : memref<128x8xf32, #tpu.memory_space<vmem>>, vector<128x8xf32>
    %cst = arith.constant dense<0.000000e+00> : vector<8x8xf32>
    %2 = tpu.matmul %0, %1, %cst {dimension_numbers = #tpu.dot_dimension_numbers<[1], [0], [0], [1], [0, 0, 1, 1], [], []>} : vector<8x128xf32>, vector<128x8xf32>, vector<8x8xf32> -> vector<8x8xf32>
    %c0_3 = arith.constant 0 : index
    %c0_4 = arith.constant 0 : index
    %3 = vector.load %arg2[%c0_3, %c0_4] : memref<1x8xf32, #tpu.memory_space<vmem>>, vector<1x8xf32>
    %4 = vector.broadcast %3 : vector<1x8xf32> to vector<8x8xf32>
    %5 = arith.addf %2, %4 : vector<8x8xf32>
    %6 = tpu.iota {dimensions = array<i32: 1>} : vector<8x8xi32>
    %c4_i32 = arith.constant 4 : i32
    %7 = vector.broadcast %c4_i32 : i32 to vector<8x8xi32>
    %8 = arith.cmpi sge, %6, %7 : vector<8x8xi32>
    %cst_5 = arith.constant -2.000000e+01 : f32
    %cst_6 = arith.constant 2.000000e+00 : f32
    %9 = vector.broadcast %cst_5 : f32 to vector<8x8xf32>
    %10 = arith.maximumf %9, %5 : vector<8x8xf32>
    %11 = vector.broadcast %cst_6 : f32 to vector<8x8xf32>
    %12 = arith.minimumf %11, %10 : vector<8x8xf32>
    %13 = arith.select %8, %12, %5 : vector<8x8xi1>, vector<8x8xf32>
    %c0_7 = arith.constant 0 : index
    %c0_8 = arith.constant 0 : index
    %14 = vector.load %arg3[%c0_7, %c0_8] : memref<8x8xf32, #tpu.memory_space<vmem>>, vector<8x8xf32>
    tpu.vector_store %arg3[%c0_7, %c0_8], %13 {strides = array<i32>} : memref<8x8xf32, #tpu.memory_space<vmem>>, vector<8x8xf32>,
    return
  }
}

</mosaic_0001>

<bundles_post_ra>
// kernel: tpu_custom_call.1
= control target key start
LH: loop header
LB: loop body
LE: loop exit
PB: predicated region body
PF: predicated region fallthrough
CT: control target
= control target key end

     0   :  { %s186_s0 = inlined_call_operand.vmem [shape: f32[8,128], index: 0, kind: input, shape index: {}]   ;;  %s187_s1 = inlined_call_operand.vmem [shape: f32[128,8], index: 1, kind: input, shape index: {}]   ;;  %s188_s2 = inlined_call_operand.vmem [shape: f32[1,8], index: 2, kind: input, shape index: {}]   ;;  %s189_s3 = inlined_call_operand.hbm [shape: f32[8,8], index: 3, kind: output, shape index: {}]  }
   0x1   :  { %v31_v0 = vld [vmem:[%s187_s1 + $0x78] sm:$0xff]  ;;  %v30_v1 = vld [vmem:[%s187_s1 + $0x70] sm:$0xff]  ;;  %v29_v2 = vld [vmem:[%s187_s1 + $0x68] sm:$0xff] }
   0x2   :  { %36 = vmatpush.msra.mxu0 %v31_v0  ;;  %v28_v3 = vld [vmem:[%s187_s1 + $0x60] sm:$0xff]  ;;  %v27_v4 = vld [vmem:[%s187_s1 + $0x58] sm:$0xff] }
   0x4   :  { %37 = vmatpush.msra.mxu0 %v30_v1 }
   0x6   :  { %38 = vmatpush.msra.mxu0 %v29_v2 }
   0x7   :  { %8 = vsyncpa [#allocation3], 0  ;;  %v26_v5 = vld [vmem:[%s187_s1 + $0x50] sm:$0xff]  ;;  %v25_v6 = vld [vmem:[%s187_s1 + $0x48] sm:$0xff]  ;;  %v56_v17 = vlaneseq  ;;  %s108_s21 = smov [#allocation2]   ;;  %s71_s24 = sshll.u32 %s189_s3, 4  ;;  %s72_s24 = int_to_ptr.hbm [resolvable:$true] %s71_s24 }
   0x8   :  { %39 = vmatpush.msra.mxu0 %v28_v3  ;;  %v24_v7 = vld [vmem:[%s187_s1 + $0x40] sm:$0xff]  ;;  %v23_v8 = vld [vmem:[%s187_s1 + $0x38] sm:$0xff]  ;;  %v22_v9 = vld [vmem:[%s187_s1 + $0x30] sm:$0xff]  ;;  %s69_s22 = sshll.u32 %s108_s21, 4  ;;  %vm62_vm1 = vcmask 64512   ;;  %s70_s22 = int_to_ptr.vmem [resolvable:$true] %s69_s22 }
   0x9   :  { %v21_v10 = vld [vmem:[%s187_s1 + $0x28] sm:$0xff]  ;;  %v20_v11 = vld [vmem:[%s187_s1 + $0x20] sm:$0xff]  ;;  %v19_v12 = vld [vmem:[%s187_s1 + $0x18] sm:$0xff]  ;;  %v57_v20 = vand.u32 127, %v56_v17 }
   0xa   :  { %40 = vmatpush.msra.mxu0 %v27_v4  ;;  %v18_v13 = vld [vmem:[%s187_s1 + $0x10] sm:$0xff]  ;;  %v17_v14 = vld [vmem:[%s187_s1 + $0x8] sm:$0xff]  ;;  %v16_v15 = vld [vmem:[%s187_s1] sm:$0xff] }
   0xb   :  { %v15_v16 = vld [vmem:[%s186_s0] sm:$0xff]  ;;  %vm58_vm0 = vcmp.ge.s32.totalorder %v57_v20, 4 }
   0xc   :  { %41 = vmatpush.msra.mxu0 %v26_v5  ;;  %v81_v18 = vld [vmem:[%s188_s2] ss:$0 sm:$0xff] }
   0xe   :  { %42 = vmatpush.msra.mxu0 %v25_v6 }
  0x10   :  { %43 = vmatpush.msra.mxu0 %v24_v7 }
  0x12   :  { %44 = vmatpush.msra.mxu0 %v23_v8 }
  0x14   :  { %45 = vmatpush.msra.mxu0 %v22_v9 }
  0x16   :  { %46 = vmatpush.msra.mxu0 %v21_v10 }
  0x18   :  { %47 = vmatpush.msra.mxu0 %v20_v11 }
  0x1a   :  { %48 = vmatpush.msra.mxu0 %v19_v12 }
  0x1c   :  { %49 = vmatpush.msra.mxu0 %v18_v13 }
  0x1e   :  { %50 = vmatpush.msra.mxu0 %v17_v14 }
  0x20   :  { %51 = vmatpush.msra.mxu0 %v16_v15 }
  0x21   :  { %52 = vmatmul.f32.vlgmr.msra.gmra.mxu0 %v15_v16 }
  0x9e   :  { %v53_v19 = vpop.f32.mrf.mxu0 }
  0x9f   :  { %v54_v21 = vadd.f32 %v81_v18, %v53_v19 }
  0xa1   :  { %v59_v22 = vmax.f32 %v54_v21, -20.0 }
  0xa3   :  { %v60_v23 = vmin.f32 %v59_v22, 2.0 }
  0xa5   :  { %v61_v24 = vsel %vm58_vm0, %v60_v23, %v54_v21 }
  0xa6   :  { %63 = vst.msk [vmem:[#allocation2] sm:$0xff] %vm62_vm1, %v61_v24 }
  0xa7   :  { %74 = dma.vmem_to_hbm [thread:$0]  %s70_s22, 128, %s72_s24, [#allocation3]  }
  0xa8   :  { %106 = dma.done.wait [#allocation3], 128  }
  0xa9   :  { %107 = vsyncadd [#allocation3], 4294967168 }
  0xaa   :  { %79 = vsyncpa [#allocation3], 1 }

</bundles_post_ra>
